<compile_context>
chip_gen: v7x
topology: tpu7x:2x2x1
jax: 0.10.0
libtpu: 0.0.40
codegen_flags: <defaults>
</compile_context>

<pallas_src>
import math
from functools import partial

import jax
import jax.numpy as jnp
from jax.experimental import pallas as pl
from jax.experimental.pallas import tpu as pltpu


_HALO = 8      # sublane-aligned halo rows appended to each input row-tile
_LANE = 128    # TPU lane width


def _round_up(x, m):
    return (x + m - 1) // m * m


# ----------------------------------------------------------------------------
# Fused PE-add + Conv1d kernel (one (out-row-tile, batch) grid step)
# ----------------------------------------------------------------------------
def _fused_pe_conv_kernel(
    xb_ref, xh_ref, peb_ref, peh_ref, w_ref, b_ref, o_ref, xs_ref,
    *, tm, stride, ksize,
):
    """
    xb : (1, tm*stride, D_in_pad)  body rows of the zero-padded activations
    xh : (1, _HALO,     D_in_pad)  halo rows (start of the next tile's window)
    peb: (tm*stride, D_in_pad)     positional-encoding rows matching xb
    peh: (_HALO, D_in_pad)         positional-encoding rows matching xh
    w  : (K*D_in_pad, D_out_pad)   folded conv weights (resident across grid)
    b  : (1, D_out_pad) f32        conv bias (resident)
    o  : (1, tm, D_out_pad)
    xs : (tm*stride + _HALO, D_in_pad) VMEM scratch holding (x + pe)
    """
    tms = tm * stride

    # Fused positional-encoding add (VPU work, hides under DMA / MXU).
    xs_ref[pl.ds(0, tms), :] = (xb_ref[0] + peb_ref[...]).astype(xs_ref.dtype)
    xs_ref[pl.ds(tms, _HALO), :] = (xh_ref[0] + peh_ref[...]).astype(xs_ref.dtype)

    # Conv1d: all K taps folded into a single long-contraction MXU matmul
    # (lane-aligned pieces since D_in is padded to a multiple of 128).
    # TODO(synk): for stride > 1 a phase-major scratch layout would turn the
    # strided sublane reads below into contiguous slices.
    if stride == 1:
        taps = [xs_ref[pl.ds(k, tm), :] for k in range(ksize)]
    else:
        taps = [xs_ref[pl.ds(k, tm, stride), :] for k in range(ksize)]
    xcol = taps[0] if ksize == 1 else jnp.concatenate(taps, axis=-1)

    acc = jnp.dot(xcol, w_ref[...], preferred_element_type=jnp.float32)
    o_ref[0] = (acc + b_ref[...]).astype(o_ref.dtype)


# ----------------------------------------------------------------------------
# One-time parameter transform (hoisted out of the per-call jitted path)
# ----------------------------------------------------------------------------
def sinusoidal_pe(max_seq_len, dim, dtype=jnp.float32):
    assert dim % 2 == 0, "sinusoidal PE requires an even embedding dim"
    position = jnp.arange(max_seq_len, dtype=jnp.float32)[:, None]
    div_term = jnp.exp(
        jnp.arange(0, dim, 2, dtype=jnp.float32) * (-math.log(10000.0) / dim)
    )
    pe = jnp.zeros((max_seq_len, dim), dtype=jnp.float32)
    pe = pe.at[:, 0::2].set(jnp.sin(position * div_term))
    pe = pe.at[:, 1::2].set(jnp.cos(position * div_term))
    return pe.astype(dtype)


def prepare_conv_embedding_params(raw, *, kernel_size, compute_dtype=None):
    """Pre-transform parameters once (not per forward call).

    * Appends a zero "padding" row to the embedding table and pads the feature
      dim (contraction / lane dim) to a multiple of 128.
    * Reshapes the PyTorch-layout Conv1d weight (D_out, D_in, K) into a single
      (K*D_in_pad, D_out_pad) matmul operand and pads the bias.
    * On v6e/v7x pass compute_dtype=jnp.bfloat16 for MXU-native matmuls and
      half the activation/weight DMA bytes.
    """
    emb, conv_w, conv_b, pe = raw["embedding"], raw["conv_w"], raw["conv_b"], raw["pe"]
    dtype = compute_dtype if compute_dtype is not None else emb.dtype

    vocab, d_in = emb.shape
    d_out, d_in_w, ksz = conv_w.shape
    assert d_in_w == d_in and ksz == kernel_size

    d_in_pad = _round_up(d_in, _LANE)
    d_out_pad = d_out if d_out % _LANE == 0 else _round_up(d_out, _LANE)

    emb_ext = (jnp.zeros((vocab + 1, d_in_pad), dtype)
               .at[:vocab, :d_in].set(emb.astype(dtype)))          # last row = pad row
    pe_pad = (jnp.zeros((pe.shape[0], d_in_pad), dtype)
              .at[:, :d_in].set(pe.astype(dtype)))

    w = jnp.transpose(conv_w, (2, 1, 0)).astype(dtype)              # (K, d_in, d_out)
    w_full = (jnp.zeros((kernel_size, d_in_pad, d_out_pad), dtype)
              .at[:, :d_in, :d_out].set(w))
    w2 = w_full.reshape(kernel_size * d_in_pad, d_out_pad)          # folded-tap weight

    bias = (jnp.zeros((1, d_out_pad), jnp.float32)
            .at[0, :d_out].set(conv_b.astype(jnp.float32)))

    return {"emb_ext": emb_ext, "pe": pe_pad, "w2": w2, "bias": bias}


# ----------------------------------------------------------------------------
# Module-equivalent forward
# ----------------------------------------------------------------------------
def conv_embedding_forward(tokens, params, *, kernel_size, stride, padding, d_out):
    """tokens: (B, N) int32.  params: output of prepare_conv_embedding_params.
    Returns (B, N_out, d_out)."""
    emb_ext, pe, w2, bias = params["emb_ext"], params["pe"], params["w2"], params["bias"]

    b, n = tokens.shape
    d_in_pad = emb_ext.shape[1]
    d_out_pad = w2.shape[1]
    dtype = emb_ext.dtype
    itemsize = jnp.dtype(dtype).itemsize

    if n > pe.shape[0]:
        raise ValueError(f"sequence length {n} exceeds max_seq_len {pe.shape[0]}")
    if kernel_size - stride > _HALO:
        # TODO(synk): support very wide kernels by enlarging the halo block.
        raise NotImplementedError("kernel_size - stride > 8 not supported")

    n_out = (n + 2 * padding - kernel_size) // stride + 1

    # ---- generation-aware tiling ------------------------------------------
    try:
        vmem_cap = int(pltpu.get_tpu_info().vmem_capacity_bytes)
    except Exception:
        vmem_cap = 64 * 1024 * 1024           # conservative fallback (v7x per-TC)

    def est_vmem(tm_):
        tms_ = tm_ * stride
        act_tile = (tms_ + _HALO) * d_in_pad * itemsize
        w_bytes = kernel_size * d_in_pad * d_out_pad * itemsize + d_out_pad * 4
        out_tile = tm_ * d_out_pad * itemsize
        # x + pe blocks double-buffered, resident w/bias double-buffered by
        # default, output double-buffered, plus the xs scratch.
        # TODO(synk): single-buffer the resident weight block on v7x for very
        # large D_in*D_out (pipeline_mode=pl.Buffered(1) or a one-shot DMA).
        return 2 * 2 * act_tile + 2 * w_bytes + 2 * out_tile + act_tile

    tm_cap = _round_up(n_out, 8)
    tm = 8
    for cand in (1024, 512, 256, 128, 64, 32, 16, 8):
        if est_vmem(cand) <= 0.55 * vmem_cap:
            tm = cand
            break
    tm = min(tm, tm_cap)

    nt = pl.cdiv(n_out, tm)
    tms = tm * stride
    total_rows = nt * tms + _HALO
    assert n + 2 * padding <= total_rows
    halo_blocks = tms // _HALO                 # tms is a multiple of 8

    need = est_vmem(tm)
    vmem_limit = int(min(2 * need + (8 << 20), int(0.9 * vmem_cap)))
    vmem_limit = max(vmem_limit, need + (8 << 20))

    # ---- plain-JAX glue -----------------------------------------------------
    # Token-id padding trick: pad positions index the appended zero row, so the
    # gather directly emits the zero-padded activation layout (no jnp.pad HBM
    # round trip of the activations).
    # TODO(synk): fuse the gather itself (scalar-prefetch ids + in-kernel /
    # DMA row gather) to also remove the gather-output HBM write+read.
    sentinel = emb_ext.shape[0] - 1
    tok_pad = jnp.full((b, total_rows), sentinel, dtype=jnp.int32)
    tok_pad = tok_pad.at[:, padding:padding + n].set(tokens.astype(jnp.int32))
    x_pad = jnp.take(emb_ext, tok_pad, axis=0)            # (B, total_rows, d_in_pad)

    pe_rows = (jnp.zeros((total_rows, d_in_pad), dtype)
               .at[padding:padding + n].set(pe[:n]))

    flops = 2 * b * n_out * kernel_size * d_in_pad * d_out_pad
    bytes_accessed = int(x_pad.size * itemsize + pe_rows.size * itemsize
                         + w2.size * itemsize + bias.size * 4
                         + b * n_out * d_out_pad * itemsize)

    kernel = partial(_fused_pe_conv_kernel, tm=tm, stride=stride, ksize=kernel_size)

    out = pl.pallas_call(
        kernel,
        out_shape=jax.ShapeDtypeStruct((b, n_out, d_out_pad), dtype),
        grid_spec=pltpu.PrefetchScalarGridSpec(
            num_scalar_prefetch=0,
            # Row tiles outer, batch innermost: PE block indices are constant
            # across consecutive steps -> Pallas skips their re-fetch.
            grid=(nt, b),
            in_specs=[
                # activation body rows for this output tile
                pl.BlockSpec((1, tms, d_in_pad), lambda j, bi: (bi, j, 0)),
                # activation halo rows (first rows of the next tile's window)
                pl.BlockSpec((1, _HALO, d_in_pad),
                             lambda j, bi: (bi, (j + 1) * halo_blocks, 0)),
                # positional encoding (batch-independent -> reused across batch)
                pl.BlockSpec((tms, d_in_pad), lambda j, bi: (j, 0)),
                pl.BlockSpec((_HALO, d_in_pad),
                             lambda j, bi: ((j + 1) * halo_blocks, 0)),
                # resident folded conv weight + bias (constant index_map)
                pl.BlockSpec((kernel_size * d_in_pad, d_out_pad), lambda j, bi: (0, 0)),
                pl.BlockSpec((1, d_out_pad), lambda j, bi: (0, 0)),
            ],
            out_specs=pl.BlockSpec((1, tm, d_out_pad), lambda j, bi: (bi, j, 0)),
            scratch_shapes=[pltpu.VMEM((tms + _HALO, d_in_pad), dtype)],
        ),
        compiler_params=pltpu.CompilerParams(
            dimension_semantics=("parallel", "parallel"),
            vmem_limit_bytes=vmem_limit,
        ),
        cost_estimate=pl.CostEstimate(
            flops=flops, transcendentals=0, bytes_accessed=bytes_accessed),
    )(x_pad, x_pad, pe_rows, pe_rows, w2, bias)

    # Lane-pad slice only when D_out is not already a multiple of 128.
    return out if d_out_pad == d_out else out[..., :d_out]


# ----------------------------------------------------------------------------
# Demo / correctness check
# ----------------------------------------------------------------------------
if __name__ == "__main__":
    vocab_size = 50
    max_seq_len = 16
    dim = 32
    kernel_size = 3
    stride = 1
    padding = 1
    batch, seq = 2, 8

    key = jax.random.PRNGKey(0)
    k_emb, k_w, k_b, k_tok = jax.random.split(key, 4)

    fan_in = dim * kernel_size
    bound = 1.0 / math.sqrt(fan_in)
    raw_params = {
        "embedding": jax.random.normal(k_emb, (vocab_size, dim), jnp.float32),
        "conv_w": jax.random.uniform(
            k_w, (dim, dim, kernel_size), jnp.float32, -bound, bound),
        "conv_b": jax.random.uniform(k_b, (dim,), jnp.float32, -bound, bound),
        "pe": sinusoidal_pe(max_seq_len, dim),
    }
    tokens = jax.random.randint(k_tok, (batch, seq), 0, vocab_size, jnp.int32)

    # One-time parameter transform (hoisted out of the jitted forward).
    prepared = prepare_conv_embedding_params(raw_params, kernel_size=kernel_size)
    prepared = jax.block_until_ready(prepared)

    fwd = jax.jit(partial(
        conv_embedding_forward,
        kernel_size=kernel_size, stride=stride, padding=padding, d_out=dim))
    out = fwd(tokens, prepared)
    jax.block_until_ready(out)

    # Reference (pure JAX / XLA conv) for sanity.
    x_ref = jnp.take(raw_params["embedding"], tokens, axis=0) + raw_params["pe"][:seq][None]
    x_ncw = jnp.transpose(x_ref, (0, 2, 1))                        # (B, D, N)
    ref = jax.lax.conv_general_dilated(
        x_ncw,
        raw_params["conv_w"],
        window_strides=(stride,),
        padding=[(padding, padding)],
        dimension_numbers=("NCH", "OIH", "NCH"),
    ) + raw_params["conv_b"][None, :, None]
    ref = jnp.transpose(ref, (0, 2, 1))                            # (B, N_out, D)

    assert out.shape == ref.shape, (out.shape, ref.shape)
    max_err = float(jnp.max(jnp.abs(out - ref)))
    assert jnp.allclose(out, ref, atol=2e-3, rtol=2e-3), max_err
    print("KERNEL_OK")
</pallas_src>

<mosaic_0001>
module attributes {stable_mosaic.version = 11 : i64} {
  func.func @_fused_pe_conv_kernel(%arg0: i32, %arg1: i32, %arg2: memref<1x8x128xf32, #tpu.memory_space<vmem>>, %arg3: memref<1x8x128xf32, #tpu.memory_space<vmem>>, %arg4: memref<8x128xf32, #tpu.memory_space<vmem>>, %arg5: memref<8x128xf32, #tpu.memory_space<vmem>>, %arg6: memref<384x128xf32, #tpu.memory_space<vmem>>, %arg7: memref<1x128xf32, #tpu.memory_space<vmem>>, %arg8: memref<1x8x128xf32, #tpu.memory_space<vmem>>, %arg9: memref<16x128xf32, #tpu.memory_space<vmem>>) attributes {dimension_semantics = [#tpu.dimension_semantics<parallel>, #tpu.dimension_semantics<parallel>], iteration_bounds = array<i64: 1, 2>, scalar_prefetch = 0 : i64, scratch_operands = 1 : i64, tpu.core_type = #tpu.core_type<tc>, window_params = [{transform_indices = @transform_0, window_bounds = array<i64: 1, 8, 128>}, {transform_indices = @transform_1, window_bounds = array<i64: 1, 8, 128>}, {transform_indices = @transform_2, window_bounds = array<i64: 8, 128>}, {transform_indices = @transform_3, window_bounds = array<i64: 8, 128>}, {pipeline_mode = #tpu.pipeline_mode<synchronous>, transform_indices = @transform_4, window_bounds = array<i64: 384, 128>}, {pipeline_mode = #tpu.pipeline_mode<synchronous>, transform_indices = @transform_5, window_bounds = array<i64: 1, 128>}, {transform_indices = @transform_6, window_bounds = array<i64: 1, 8, 128>}]} {
    %c0 = arith.constant 0 : index
    %c0_0 = arith.constant 0 : index
    %c0_1 = arith.constant 0 : index
    %0 = vector.load %arg2[%c0, %c0_0, %c0_1] : memref<1x8x128xf32, #tpu.memory_space<vmem>>, vector<1x8x128xf32>
    %1 = vector.shape_cast %0 : vector<1x8x128xf32> to vector<8x128xf32>
    %c0_2 = arith.constant 0 : index
    %c0_3 = arith.constant 0 : index
    %2 = vector.load %arg4[%c0_2, %c0_3] : memref<8x128xf32, #tpu.memory_space<vmem>>, vector<8x128xf32>
    %3 = arith.addf %1, %2 : vector<8x128xf32>
    %c0_4 = arith.constant 0 : index
    %c0_5 = arith.constant 0 : index
    %4 = vector.load %arg9[%c0_4, %c0_5] : memref<16x128xf32, #tpu.memory_space<vmem>>, vector<8x128xf32>
    tpu.vector_store %arg9[%c0_4, %c0_5], %3 {strides = array<i32>} : memref<16x128xf32, #tpu.memory_space<vmem>>, vector<8x128xf32>,
    %c0_6 = arith.constant 0 : index
    %c0_7 = arith.constant 0 : index
    %c0_8 = arith.constant 0 : index
    %5 = vector.load %arg3[%c0_6, %c0_7, %c0_8] : memref<1x8x128xf32, #tpu.memory_space<vmem>>, vector<1x8x128xf32>
    %6 = vector.shape_cast %5 : vector<1x8x128xf32> to vector<8x128xf32>
    %c0_9 = arith.constant 0 : index
    %c0_10 = arith.constant 0 : index
    %7 = vector.load %arg5[%c0_9, %c0_10] : memref<8x128xf32, #tpu.memory_space<vmem>>, vector<8x128xf32>
    %8 = arith.addf %6, %7 : vector<8x128xf32>
    %c8 = arith.constant 8 : index
    %c0_11 = arith.constant 0 : index
    %9 = vector.load %arg9[%c8, %c0_11] : memref<16x128xf32, #tpu.memory_space<vmem>>, vector<8x128xf32>
    tpu.vector_store %arg9[%c8, %c0_11], %8 {strides = array<i32>} : memref<16x128xf32, #tpu.memory_space<vmem>>, vector<8x128xf32>,
    %c0_12 = arith.constant 0 : index
    %c0_13 = arith.constant 0 : index
    %10 = vector.load %arg9[%c0_12, %c0_13] : memref<16x128xf32, #tpu.memory_space<vmem>>, vector<8x128xf32>
    %c1 = arith.constant 1 : index
    %c0_14 = arith.constant 0 : index
    %11 = vector.load %arg9[%c1, %c0_14] : memref<16x128xf32, #tpu.memory_space<vmem>>, vector<8x128xf32>
    %c2 = arith.constant 2 : index
    %c0_15 = arith.constant 0 : index
    %12 = vector.load %arg9[%c2, %c0_15] : memref<16x128xf32, #tpu.memory_space<vmem>>, vector<8x128xf32>
    %13 = tpu.concatenate %10, %11, %12 in 1 : vector<8x128xf32>, vector<8x128xf32>, vector<8x128xf32> -> vector<8x384xf32>
    %c0_16 = arith.constant 0 : index
    %c0_17 = arith.constant 0 : index
    %14 = vector.load %arg6[%c0_16, %c0_17] : memref<384x128xf32, #tpu.memory_space<vmem>>, vector<384x128xf32>
    %cst = arith.constant dense<0.000000e+00> : vector<8x128xf32>
    %15 = tpu.matmul %13, %14, %cst {dimension_numbers = #tpu.dot_dimension_numbers<[1], [0], [0], [1], [0, 0, 1, 1], [], []>} : vector<8x384xf32>, vector<384x128xf32>, vector<8x128xf32> -> vector<8x128xf32>
    %c0_18 = arith.constant 0 : index
    %c0_19 = arith.constant 0 : index
    %16 = vector.load %arg7[%c0_18, %c0_19] : memref<1x128xf32, #tpu.memory_space<vmem>>, vector<1x128xf32>
    %17 = vector.broadcast %16 : vector<1x128xf32> to vector<8x128xf32>
    %18 = arith.addf %15, %17 : vector<8x128xf32>
    %c0_20 = arith.constant 0 : index
    %c0_21 = arith.constant 0 : index
    %c0_22 = arith.constant 0 : index
    %19 = vector.load %arg8[%c0_20, %c0_21, %c0_22] : memref<1x8x128xf32, #tpu.memory_space<vmem>>, vector<1x8x128xf32>
    %20 = vector.shape_cast %19 : vector<1x8x128xf32> to vector<8x128xf32>
    %21 = vector.shape_cast %18 : vector<8x128xf32> to vector<1x8x128xf32>
    tpu.vector_store %arg8[%c0_20, %c0_21, %c0_22], %21 {strides = array<i32>} : memref<1x8x128xf32, #tpu.memory_space<vmem>>, vector<1x8x128xf32>,
    return
  }
  func.func @transform_0(%arg0: i32, %arg1: i32) -> (i32, i32, i32) {
    %c0_i32 = arith.constant 0 : i32
    %c0_i32_0 = arith.constant 0 : i32
    return %arg1, %arg0, %c0_i32 : i32, i32, i32
  }
  func.func @transform_1(%arg0: i32, %arg1: i32) -> (i32, i32, i32) {
    %c1_i32 = arith.constant 1 : i32
    %0 = arith.addi %arg0, %c1_i32 : i32
    %c1_i32_0 = arith.constant 1 : i32
    %1 = arith.muli %0, %c1_i32_0 : i32
    %c0_i32 = arith.constant 0 : i32
    %c0_i32_1 = arith.constant 0 : i32
    return %arg1, %1, %c0_i32 : i32, i32, i32
  }
  func.func @transform_2(%arg0: i32, %arg1: i32) -> (i32, i32) {
    %c0_i32 = arith.constant 0 : i32
    %c0_i32_0 = arith.constant 0 : i32
    return %arg0, %c0_i32 : i32, i32
  }
  func.func @transform_3(%arg0: i32, %arg1: i32) -> (i32, i32) {
    %c1_i32 = arith.constant 1 : i32
    %0 = arith.addi %arg0, %c1_i32 : i32
    %c1_i32_0 = arith.constant 1 : i32
    %1 = arith.muli %0, %c1_i32_0 : i32
    %c0_i32 = arith.constant 0 : i32
    %c0_i32_1 = arith.constant 0 : i32
    return %1, %c0_i32 : i32, i32
  }
  func.func @transform_4(%arg0: i32, %arg1: i32) -> (i32, i32) {
    %c0_i32 = arith.constant 0 : i32
    %c0_i32_0 = arith.constant 0 : i32
    %c0_i32_1 = arith.constant 0 : i32
    return %c0_i32, %c0_i32_0 : i32, i32
  }
  func.func @transform_5(%arg0: i32, %arg1: i32) -> (i32, i32) {
    %c0_i32 = arith.constant 0 : i32
    %c0_i32_0 = arith.constant 0 : i32
    %c0_i32_1 = arith.constant 0 : i32
    return %c0_i32, %c0_i32_0 : i32, i32
  }
  func.func @transform_6(%arg0: i32, %arg1: i32) -> (i32, i32, i32) {
    %c0_i32 = arith.constant 0 : i32
    %c0_i32_0 = arith.constant 0 : i32
    return %arg1, %arg0, %c0_i32 : i32, i32, i32
  }
}

</mosaic_0001>

<bundles_post_ra>
// kernel: conv_embedding_forward.1
= control target key start
LH: loop header
LB: loop body
LE: loop exit
PB: predicated region body
PF: predicated region fallthrough
CT: control target
= control target key end

     0   :  { %11 = vsyncpa [#allocation4], 0  ;;  %s1321_s0 = inlined_call_operand.vmem [shape: f32[2,16,128], index: 0, kind: input, shape index: {}, may-alias: {0,1}]   ;;  %s1322_s1 = inlined_call_operand.vmem [shape: f32[2,16,128], index: 1, kind: input, shape index: {}, may-alias: {0,1}]   ;;  %s1323_s2 = inlined_call_operand.vmem [shape: f32[16,128], index: 2, kind: input, shape index: {}, may-alias: {2,3}]   ;;  %s1324_s3 = inlined_call_operand.vmem [shape: f32[16,128], index: 3, kind: input, shape index: {}, may-alias: {2,3}]   ;;  %s1325_s4 = inlined_call_operand.vmem [shape: f32[384,128], index: 4, kind: input, shape index: {}]   ;;  %s1326_s5 = inlined_call_operand.vmem [shape: f32[1,128], index: 5, kind: input, shape index: {}]   ;;  %s1327_s6 = inlined_call_operand.hbm [shape: f32[2,8,128], index: 6, kind: output, shape index: {}]  }
   0x1   :  { %13 = vsyncpa [#allocation4 + $0x1], 0  ;;  %s1040_s21 = smov 0   ;;  %s1042_s22 = smov 0  }
   0x2   :  { %s1044_s23 = smov 0   ;;  %s1046_s24 = smov 0  }
   0x3   :  { %s1048_s25 = smov 0   ;;  %s1050_s26 = smov 0  }
   0x4 LB: > { %s698_s27 = sadd.s32 4294967295, %s999_s26   ;;  %s699_s28 = sadd.s32 4294967294, %s999_s26   ;;  %s999_s26 = sphi %s1050_s26, %s19_s26   ;;  %s995_s25 = sphi %s1048_s25, %s1334_s25   ;;  %s991_s24 = sphi %s1046_s24, %s1333_s24   ;;  %s987_s23 = sphi %s1044_s23, %s1332_s23   ;;  %s983_s22 = sphi %s1042_s22, %s1331_s22   ;;  %s979_s21 = sphi %s1040_s21, %s1330_s21  }
   0x5   : > { %s28_s29 = sadd.s32 1, %s995_s25  ;;  %s194_s30 = sadd.s32 1, %s987_s23 }
   0x6   : > { %p29_p0 = scmp.ge.s32.totalorder %s28_s29, 2  ;;  %p204_p1 = scmp.ne.s32.totalorder %s987_s23, %s983_s22 }
   0x7   : > { %p205_p2 = scmp.eq.s32.totalorder %s698_s27, 1  ;;  %p210_p3 = scmp.ne.s32.totalorder %s983_s22, %s979_s21 }
   0x8   : > { %s1336_s29 = smov (%p29_p0, %s28_s29), 0  ;;  %p211_p5 = scmp.eq.s32.totalorder %s699_s28, 1 }
   0x9   : > { %p1080_p4 = por %p205_p2, %p204_p1  ;;  %s189_s8 = ssub.s32 %s995_s25, %s1336_s29 }
   0xa   : > { %p704_p6 = scmp.ge.s32.totalorder %s999_s26, 1  ;;  %p192_p7 = scmp.eq.s32.totalorder %s189_s8, 0 }
   0xb   : > { %p1087_p8 = por %p211_p5, %p210_p3  ;;  %p275_p9 = scmp.lt.s32.totalorder %s999_s26, 3 }
   0xc   : > { %s1093_s10 = scalar_select %p192_p7, %s987_s23, %s194_s30  }
   0xd   : > { %p276_p10 = pnand %p704_p6, %p275_p9 }
   0xe   : > { %v381_v0 = vld [vmem:[%s1325_s4 + $0x80] sm:$0xff] (!%p276_p10)  ;;  %v382_v1 = vld [vmem:[%s1325_s4 + $0x88] sm:$0xff] (!%p276_p10)  ;;  %p326_p11 = scmp.lt.s32.totalorder (!%p276_p10), %s991_s24, 1  ;;  %v383_v5 = vld [vmem:[%s1325_s4 + $0x90] sm:$0xff] (!%p276_p10)  ;;  %v1001_v7 = vmov (!%p276_p10), 0.0|0.0   ;;  %vm1002_vm0 = vmmov (!%p276_p10), 0  }
   0xf   : > { %279 = sbr.rel (%p276_p10) target bundleno = 282 (0x11a), region = 44  ;;  %v365_v2 = vld [vmem:[%s1325_s4] sm:$0xff] (!%p276_p10)  ;;  %v807_v3 = vpack.c.bf16 (!%p276_p10), %v382_v1, %v381_v0  ;;  %v366_v4 = vld [vmem:[%s1325_s4 + $0x8] sm:$0xff] (!%p276_p10)  ;;  %v384_v6 = vld [vmem:[%s1325_s4 + $0x98] sm:$0xff] (!%p276_p10)  ;;  %839 = vmatprep.subr.bf16.mxu1 (!%p276_p10), %v1001_v7  ;;  %v1003_v13 = vmov (!%p276_p10), 0.0   ;;  %s323_s12 = sand.u32 (!%p276_p10), 1, %s983_s22  }
  0x10   : > { %v809_v8 = vpack.c.bf16 (!%p276_p10), %v366_v4, %v365_v2  ;;  %v811_v9 = vpack.c.bf16 (!%p276_p10), %v384_v6, %v383_v5  ;;  %v367_v10 = vld [vmem:[%s1325_s4 + $0x10] sm:$0xff] (!%p276_p10)  ;;  %v368_v11 = vld [vmem:[%s1325_s4 + $0x18] sm:$0xff] (!%p276_p10)  ;;  %v397_v12 = vld [vmem:[%s1325_s4 + $0x100] sm:$0xff] (!%p276_p10)  ;;  %804 = vmatprep.mubr.msk.f32.mxu1 (!%p276_p10), %vm1002_vm0, %v1003_v13  ;;  %s705_s13 = sshll.u32 (!%p276_p10), %s323_s12, 3  ;;  %s713_s16 = sshll.u32 (!%p276_p10), %s991_s24, 7 }
  0x11   : > { %808 = vmatprep.subr.bf16.mxu0 (!%p276_p10), %v807_v3  ;;  %v398_v14 = vld [vmem:[%s1325_s4 + $0x108] sm:$0xff] (!%p276_p10)  ;;  %v385_v15 = vld [vmem:[%s1325_s4 + $0xa0] sm:$0xff] (!%p276_p10)  ;;  %v813_v17 = vpack.c.bf16 (!%p276_p10), %v368_v11, %v367_v10  ;;  %v399_v19 = vld [vmem:[%s1325_s4 + $0x110] sm:$0xff] (!%p276_p10)  ;;  %s325_s17 = scalar_lea.vmem (!%p276_p10), [#allocation3], %s705_s13  ;;  %s1274_s20 = scalar_lea.hbm (!%p276_p10), %s1327_s6, %s713_s16 }
  0x12   : > { %v386_v16 = vld [vmem:[%s1325_s4 + $0xa8] sm:$0xff] (!%p276_p10)  ;;  %810 = vmatpush3.bf16.msra.mxu0 (!%p276_p10), %v809_v8  ;;  %v840_v18 = vpack.c.bf16 (!%p276_p10), %v398_v14, %v397_v12  ;;  %v369_v21 = vld [vmem:[%s1325_s4 + $0x20] sm:$0xff] (!%p276_p10)  ;;  %v400_v23 = vld [vmem:[%s1325_s4 + $0x118] sm:$0xff] (!%p276_p10)  ;;  %s562_s30 = scalar_lea.sflag (!%p276_p10), [#allocation4], %s323_s12 }
  0x13   : > { %812 = vmatprep.subr.bf16.mxu0 (!%p276_p10), %v811_v9  ;;  %v815_v20 = vpack.c.bf16 (!%p276_p10), %v386_v16, %v385_v15  ;;  %v370_v22 = vld [vmem:[%s1325_s4 + $0x28] sm:$0xff] (!%p276_p10)  ;;  %v843_v24 = vpack.c.bf16 (!%p276_p10), %v400_v23, %v399_v19  ;;  %v387_v25 = vld [vmem:[%s1325_s4 + $0xb0] sm:$0xff] (!%p276_p10)  ;;  %v388_v26 = vld [vmem:[%s1325_s4 + $0xb8] sm:$0xff] (!%p276_p10) }
  0x14   : > { %841 = vmatpush3.bf16.msra.mxu1 (!%p276_p10), %v840_v18  ;;  %v401_v27 = vld [vmem:[%s1325_s4 + $0x120] sm:$0xff] (!%p276_p10)  ;;  %v402_v28 = vld [vmem:[%s1325_s4 + $0x128] sm:$0xff] (!%p276_p10)  ;;  %v817_v29 = vpack.c.bf16 (!%p276_p10), %v370_v22, %v369_v21  ;;  %v819_v30 = vpack.c.bf16 (!%p276_p10), %v388_v26, %v387_v25  ;;  %v371_v31 = vld [vmem:[%s1325_s4 + $0x30] sm:$0xff] (!%p276_p10) }
  0x15   : > { %842 = vmatprep.subr.bf16.mxu1 (!%p276_p10), %v1001_v7  ;;  %v372_v32 = vld [vmem:[%s1325_s4 + $0x38] sm:$0xff] (!%p276_p10)  ;;  %v846_v33 = vpack.c.bf16 (!%p276_p10), %v402_v28, %v401_v27  ;;  %v389_v34 = vld [vmem:[%s1325_s4 + $0xc0] sm:$0xff] (!%p276_p10)  ;;  %v390_v35 = vld [vmem:[%s1325_s4 + $0xc8] sm:$0xff] (!%p276_p10) }
  0x16   : > { %s1136_s27 = scalar_select %p326_p11, %s991_s24, 1  ;;  %814 = vmatpush3.bf16.msra.mxu0 %v813_v17  ;;  %v403_v36 = vld [vmem:[%s1325_s4 + $0x130] sm:$0xff]  ;;  %v404_v37 = vld [vmem:[%s1325_s4 + $0x138] sm:$0xff]  ;;  %v821_v38 = vpack.c.bf16 %v372_v32, %v371_v31  ;;  %v823_v39 = vpack.c.bf16 %v390_v35, %v389_v34  ;;  %v373_v40 = vld [vmem:[%s1325_s4 + $0x40] sm:$0xff] }
  0x17   : > { %816 = vmatprep.subr.bf16.mxu0 %v815_v20  ;;  %v374_v41 = vld [vmem:[%s1325_s4 + $0x48] sm:$0xff]  ;;  %v849_v42 = vpack.c.bf16 %v404_v37, %v403_v36  ;;  %v391_v43 = vld [vmem:[%s1325_s4 + $0xd0] sm:$0xff]  ;;  %v392_v44 = vld [vmem:[%s1325_s4 + $0xd8] sm:$0xff]  ;;  %s1004_s24 = smov [#allocation3]  }
  0x18   : > { %s716_s11 = sshll.u32 %s1136_s27, 4  ;;  %844 = vmatpush3.bf16.msra.mxu1 %v843_v24  ;;  %v405_v45 = vld [vmem:[%s1325_s4 + $0x140] sm:$0xff]  ;;  %v406_v46 = vld [vmem:[%s1325_s4 + $0x148] sm:$0xff]  ;;  %v825_v49 = vpack.c.bf16 %v374_v41, %v373_v40  ;;  %v827_v53 = vpack.c.bf16 %v392_v44, %v391_v43  ;;  %v375_v54 = vld [vmem:[%s1325_s4 + $0x50] sm:$0xff] }
  0x19   : > { %s718_s19 = sadd.s32 8, %s716_s11  ;;  %845 = vmatprep.subr.bf16.mxu1 %v1001_v7  ;;  %s333_s14 = scalar_lea.vmem %s1321_s0, %s716_s11  ;;  %v355_v48 = vld [vmem:[%s1323_s2] sm:$0xff]  ;;  %v710_v52 = vld [vmem:[%s1324_s3 + $0x8] sm:$0xff]  ;;  %v376_v55 = vld [vmem:[%s1325_s4 + $0x58] sm:$0xff]  ;;  %v852_v57 = vpack.c.bf16 %v406_v46, %v405_v45 }
  0x1a   : > { %818 = vmatpush3.bf16.msra.mxu0 %v817_v29  ;;  %s342_s28 = scalar_lea.vmem %s1322_s1, %s718_s19  ;;  %v354_v47 = vld [vmem:[%s333_s14] sm:$0xff]  ;;  %v394_v59 = vld [vmem:[%s1325_s4 + $0xe8] sm:$0xff]  ;;  %v407_v60 = vld [vmem:[%s1325_s4 + $0x150] sm:$0xff]  ;;  %v829_v62 = vpack.c.bf16 %v376_v55, %v375_v54  ;;  %s576_s19 = sshll.u32 %s325_s17, 4  ;;  %s1276_s19 = int_to_ptr.vmem [resolvable:$true] %s576_s19 }
  0x1b   : > { %820 = vmatprep.subr.bf16.mxu0 %v819_v30  ;;  %v356_v50 = vadd.f32 %v355_v48, %v354_v47  ;;  %v358_v51 = vld [vmem:[%s342_s28] sm:$0xff]  ;;  %v408_v61 = vld [vmem:[%s1325_s4 + $0x158] sm:$0xff]  ;;  %v378_v1 = vld [vmem:[%s1325_s4 + $0x68] sm:$0xff]  ;;  %s921_s8 = scalar_lea.vmem %s1276_s19, 128  ;;  %s925_s11 = sshll.u32 %s1004_s24, 4  ;;  %s926_s11 = int_to_ptr.vmem [resolvable:$false] %s925_s11 }
  0x1c   : > { %847 = vmatpush3.bf16.msra.mxu1 %v846_v33  ;;  %v360_v56 = vadd.f32 %v710_v52, %v358_v51  ;;  %v393_v58 = vld [vmem:[%s1325_s4 + $0xe0] sm:$0xff]  ;;  %v855_v2 = vpack.c.bf16 %v408_v61, %v407_v60  ;;  %v395_v3 = vld [vmem:[%s1325_s4 + $0xf0] sm:$0xff]  ;;  %v396_v4 = vld [vmem:[%s1325_s4 + $0xf8] sm:$0xff]  ;;  %p922_p12 = scmp.ne.s32.totalorder %s1276_s19, %s921_s8  ;;  %s927_s14 = scalar_lea.vmem %s926_s11, 256 }
  0x1d   : > { %848 = vmatprep.subr.bf16.mxu1 %v1001_v7  ;;  %357 = vst [vmem:[#allocation2] sm:$0xff] %v356_v50  ;;  %v831_v63 = vpack.c.bf16 %v394_v59, %v393_v58  ;;  %v377_v0 = vld [vmem:[%s1325_s4 + $0x60] sm:$0xff]  ;;  %v410_v6 = vld [vmem:[%s1325_s4 + $0x168] sm:$0xff]  ;;  %v835_v9 = vpack.c.bf16 %v396_v4, %v395_v3  ;;  %v379_v10 = vld [vmem:[%s1325_s4 + $0x70] sm:$0xff]  ;;  %p928_p1 = scmp.lt.s32.totalorder %s1276_s19, %s926_s11  ;;  %p929_p2 = scmp.lt.s32.totalorder %s927_s14, %s921_s8 }
  0x1e   : > { %822 = vmatpush3.bf16.msra.mxu0 %v821_v38  ;;  %361 = vst [vmem:[#allocation2 + $0x8] sm:$0xff] %v360_v56  ;;  %v409_v5 = vld [vmem:[%s1325_s4 + $0x160] sm:$0xff]  ;;  %v833_v8 = vpack.c.bf16 %v378_v1, %v377_v0  ;;  %v380_v11 = vld [vmem:[%s1325_s4 + $0x78] sm:$0xff]  ;;  %v411_v14 = vld [vmem:[%s1325_s4 + $0x170] sm:$0xff]  ;;  %p923_p13 = pnand %p922_p12, %p1080_p4 }
  0x1f   : > { %824 = vmatprep.subr.bf16.mxu0 %v823_v39  ;;  %v858_v12 = vpack.c.bf16 %v410_v6, %v409_v5  ;;  %v412_v15 = vld [vmem:[%s1325_s4 + $0x178] sm:$0xff]  ;;  %v837_v16 = vpack.c.bf16 %v380_v11, %v379_v10  ;;  %v711_v21 = vld [vmem:[%s1326_s5] ss:$0 sm:$0xff]  ;;  %p930_p3 = por %p929_p2, %p928_p1 }
  0x20   : > { %850 = vmatpush3.bf16.msra.mxu1 %v849_v42  ;;  %v861_v17 = vpack.c.bf16 %v412_v15, %v411_v14  ;;  %p924_p0 = pneg %p923_p13 }
  0x21   : > { %851 = vmatprep.subr.bf16.mxu1 %v1001_v7 }
  0x22   : > { %826 = vmatpush3.bf16.msra.mxu0 %v825_v49  ;;  %p931_p5 = pnand %p930_p3, %p924_p0 }
  0x23   : > { %828 = vmatprep.subr.bf16.mxu0 %v827_v53 }
  0x24   : > { %853 = vmatpush3.bf16.msra.mxu1 %v852_v57 }
  0x25   : > { %854 = vmatprep.subr.bf16.mxu1 %v1001_v7  ;;  %v363_v13 = vld [vmem:[#allocation2 + $0x1] sm:$0xff] }
  0x26   : > { %830 = vmatpush3.bf16.msra.mxu0 %v829_v62  ;;  %484 = vmatprep.mubr.f32.mxu0 %v363_v13  ;;  %v364_v18 = vld [vmem:[#allocation2 + $0x2] sm:$0xff] }
  0x27   : > { %832 = vmatprep.subr.bf16.mxu0 %v831_v63 }
  0x28   : > { %856 = vmatpush3.bf16.msra.mxu1 %v855_v2 }
  0x29   : > { %857 = vmatprep.subr.bf16.mxu1 %v1001_v7 }
  0x2a   : > { %834 = vmatpush3.bf16.msra.mxu0 %v833_v8 }
  0x2b   : > { %836 = vmatprep.subr.bf16.mxu0 %v835_v9 }
  0x2c   : > { %859 = vmatpush3.bf16.msra.mxu1 %v858_v12 }
  0x2d   : > { %860 = vmatprep.subr.bf16.mxu1 %v1001_v7 }
  0x2e   : > { %838 = vmatpush3.bf16.msra.mxu0 %v837_v16 }
  0x30   : > { %862 = vmatpush3.bf16.msra.mxu1 %v861_v17 }
  0x31   : > { %485 = vmatmul.mubr.f32.vlgmr.msra.gmra.mrb[0].mxu0 %v356_v50 }
  0x33   : > { %805 = vmatmul.mubr.f32.vlgmr.msra.gmra.mrb[0].mxu1 %v364_v18 }
 0x104   : > { %v752_v19 = vpop.f32.mrb[0].mxu0 }
 0x105   : > { %v753_v20 = vpop.f32.mrb[1].mxu0 }
 0x106   : > { %v754_v22 = vadd.f32 %v753_v20, %v752_v19  ;;  %v556_v23 = vpop.f32.mrb[0].mxu1 }
 0x107   : > { %v806_v24 = vpop.f32.mrb[1].mxu1 }
 0x108   : > { %v487_v7 = vadd.f32 %v754_v22, %v711_v21 }
 0x10a   : > { %v557_v25 = vadd.f32 %v556_v23, %v487_v7 }
 0x10c   : > { %560 = vst [vmem:[%s325_s17] sm:$0xff] %v557_v25 }
 0x10d   : > { %934 = shalt.err (!%p931_p5)
}
 0x10e   : > { %s935_s12 = scalar_lea.hbm %s1274_s20, 128  ;;  %s939_s15 = scalar_lea.hbm %s1327_s6, 256 }
 0x10f   : > { %p936_p6 = scmp.ne.s32.totalorder %s1274_s20, %s935_s12  ;;  %p940_p10 = scmp.lt.u32.totalorder %s1274_s20, %s1327_s6 }
 0x110   : > { %p941_p11 = scmp.lt.u32.totalorder %s939_s15, %s935_s12  ;;  %p943_p13 = scmp.lt.u32.totalorder %s935_s12, %s1274_s20 }
 0x111   : > { %p937_p7 = pnand %p936_p6, %p1080_p4 }
 0x112   : > { %p942_p12 = por %p941_p11, %p940_p10 }
 0x113   : > { %p938_p9 = pneg %p937_p7 }
 0x114   : > { %p944_p0 = por %p943_p13, %p942_p12 }
 0x116   : > { %p945_p1 = pnand %p944_p0, %p938_p9 }
 0x118   : > { %948 = shalt.err (!%p945_p1)
}
 0x119   : > { %863 = dma.vmem_to_hbm [thread:$0]  (%p1080_p4), %s1276_s19, 128, %s1274_s20, %s562_s30  }
 0x11a PF: > { %p869_p2 = scmp.ge.s32.totalorder %s999_s26, 2  ;;  %s588_s18 = sand.u32 1, %s979_s21  }
 0x11b   : > { %s589_s27 = scalar_lea.sflag [#allocation4], %s588_s18 }
 0x11c   : > { %p866_p3 = pnand %p869_p2, %p1087_p8 }
 0x11e   : > { %974 = dma.done.wait (!%p866_p3), %s589_s27, 128  }
 0x11f   : > { %976 = vsyncadd (!%p866_p3), %s589_s27, 4294967168  ;;  %s19_s26 = sadd.s32 1, %s999_s26   ;;  %s1330_s21 = smov %s983_s22 }
 0x120   : > { %p16_p5 = scmp.ge.s32.totalorder %s19_s26, 4   ;;  %s1331_s22 = smov %s987_s23 }
 0x121   : > { %s1332_s23 = smov %s1093_s10  ;;  %s1333_s24 = smov %s995_s25 }
 0x122   : > { %s1334_s25 = smov %s1336_s29  ;;  %18 = sbr.rel (!%p16_p5) target bundleno = 4 (0x4), region = 88 }
 0x129   :  { %594 = vsyncpa [#allocation4], 1 }
 0x12a   :  { %596 = vsyncpa [#allocation4 + $0x1], 1 }

</bundles_post_ra>
